<compile_context>
chip_gen: v7x
topology: tpu7x:2x2x1
jax: 0.10.0
libtpu: 0.0.40
codegen_flags: <defaults>
</compile_context>

<pallas_src>
import functools

import jax
import jax.numpy as jnp
from jax.experimental import pallas as pl
from jax.experimental.pallas import tpu as pltpu

_LANE = 128


def _round_up(v, m):
    return ((v + m - 1) // m) * m


def _vmem_caps():
    """(per-call tile budget, vmem_limit_bytes) derived from the actual chip."""
    try:
        cap = int(pltpu.get_tpu_info().vmem_capacity_bytes)
    except Exception:  # conservative fallback: size for v7x's 64 MiB per core
        cap = 64 * 1024 * 1024
    limit = min(int(cap * 0.85), 100 * 1024 * 1024)
    return int(limit * 0.80), limit


# ----------------------------- kernels ------------------------------------ #
def _relu(v):
    return jnp.maximum(v, 0.0)


def _gcn_fused_kernel(a_ref, d_ref, m1_ref, b1_ref, w2_ref, b2_ref, o_ref):
    """Small-graph path: (A+I) resident in VMEM, both layers in one kernel.

    h1  = relu(d * ((A+I) @ m1) + b1)      m1 = d * (X @ W1)   (bf16, pre-scaled)
    out = sigmoid(d * ((A+I) @ m2) + b2)   m2 = (d * h1) @ W2
    """
    a = a_ref[...].astype(jnp.bfloat16)     # exact: entries are small integers
    d = d_ref[...]                          # [n, 1] f32 = D^-1/2
    h1 = _relu(
        d * jnp.dot(a, m1_ref[...], preferred_element_type=jnp.float32)
        + b1_ref[...])
    # TODO(synk): F.dropout(training=True) would need in-kernel PRNG
    # (pltpu.prng_seed + pltpu.stateful_bernoulli); eval mode == identity.
    m2 = jnp.dot(d * h1, w2_ref[...], preferred_element_type=jnp.float32)
    o_ref[...] = jax.nn.sigmoid(
        d * jnp.dot(a, m2.astype(jnp.bfloat16), preferred_element_type=jnp.float32)
        + b2_ref[...])


def _propagate_kernel(a_ref, m_ref, b_ref, d_ref, o_ref, acc_ref, *, activation):
    """One (row, K) grid step of activation(d * ((A+I) @ M) + b)."""
    k = pl.program_id(1)

    @pl.when(k == 0)
    def _():
        acc_ref[...] = jnp.zeros_like(acc_ref)

    acc_ref[...] += jnp.dot(a_ref[...].astype(jnp.bfloat16), m_ref[...],
                            preferred_element_type=jnp.float32)

    @pl.when(k == pl.num_programs(1) - 1)
    def _():
        y = d_ref[...] * acc_ref[...] + b_ref[...]
        o_ref[...] = activation(y).astype(o_ref.dtype)


def _propagate(a_i8, m_bf16, bias, d_row, tm, tk, activation, out_dtype, vmem_limit):
    """Row- and K-tiled pass: activation(D^-1/2 (A+I) M + b)."""
    n_rows, n_cols = a_i8.shape
    c = m_bf16.shape[1]
    grid = (n_rows // tm, n_cols // tk)
    return pl.pallas_call(
        functools.partial(_propagate_kernel, activation=activation),
        out_shape=jax.ShapeDtypeStruct((n_rows, c), out_dtype),
        grid=grid,
        in_specs=[
            pl.BlockSpec((tm, tk), lambda i, k: (i, k)),   # streamed int8 (A+I) tile
            pl.BlockSpec((tk, c), lambda i, k: (k, 0)),    # streamed dense operand tile
            pl.BlockSpec((1, c), lambda i, k: (0, 0)),     # bias
            pl.BlockSpec((tm, 1), lambda i, k: (i, 0)),    # D^-1/2 row slice
        ],
        out_specs=pl.BlockSpec((tm, c), lambda i, k: (i, 0)),
        scratch_shapes=[pltpu.VMEM((tm, c), jnp.float32)],
        compiler_params=pltpu.CompilerParams(
            dimension_semantics=("parallel", "arbitrary"),  # reduction axis last
            vmem_limit_bytes=vmem_limit,
        ),
    )(a_i8, m_bf16, bias, d_row)


# --------------------------- tiling / graph build --------------------------- #
def _choose_tiles(n, c, budget):
    n128 = _round_up(n, _LANE)
    # Column (K) tile: keep column padding at ~round_up(n, 128) when possible,
    # only padding further (<= ~12.5%) for large awkward sizes.
    if n128 <= 512:
        tk = n128
    else:
        blocks = n128 // _LANE
        f = max(f for f in (4, 3, 2, 1) if blocks % f == 0)
        tk = _LANE * f
        if tk == _LANE and n128 >= 4096:
            tk = 512
    # Row tile from the full per-call VMEM footprint:
    #   2*tm*tk (int8 A, double buffered) + ~2*tm*tk (bf16 cast temp)
    #   + 2*tk*c*2 (bf16 operand) + 2*tm*c*4 (out) + tm*c*4 (acc) + small
    fixed = 2 * tk * c * 2 + 64 * 1024
    per_tm = 4 * tk + 3 * c * 4 + 16
    tm = (budget - fixed) // per_tm
    tm = max(_LANE, min(1024, (tm // _LANE) * _LANE))
    # keep >=2 row tiles when the graph allows it (v7x has 2 TensorCores)
    tm = min(tm, max(_LANE, ((n128 // 2) // _LANE) * _LANE))
    return tm, tk


def _build_graph(edge_index, n, n_rows, n_cols):
    """Dense (A + I) padded to [n_rows, n_cols] as int8 (small-integer exact)
    plus D^-1/2 over the real nodes.  Matches PyG GCNConv with
    add_self_loops=True / normalize=True / unit edge weights; assumes the
    input edge_index carries no pre-existing self loops (duplicate edges are
    counted with multiplicity, same as the dense reference)."""
    src, dst = edge_index[0], edge_index[1]
    idx = jnp.arange(n, dtype=jnp.int32)
    a = jnp.zeros((n_rows, n_cols), jnp.float32)
    a = a.at[dst, src].add(1.0)
    a = a.at[idx, idx].add(1.0)
    deg = a.sum(axis=1)[:n]
    d = jnp.where(deg > 0.0, 1.0 / jnp.sqrt(jnp.maximum(deg, 1e-12)), 0.0)
    return a.astype(jnp.int8), d


# ------------------------------ forward ------------------------------------ #
@functools.partial(jax.jit, static_argnames=("force_tiled",))
def gcn_forward(x, edge_index, params, *, force_tiled=False):
    n, c_in = x.shape
    w1, b1, w2, b2 = params["w1"], params["b1"], params["w2"], params["b2"]
    hid = w1.shape[1]
    c_out = w2.shape[1]
    hid_pad = _round_up(hid, _LANE)
    out_pad = _round_up(c_out, _LANE)

    budget, vmem_limit = _vmem_caps()

    # Lane-pad the tiny weights/biases (extra lanes only produce discarded
    # output columns; 128-wide stores stay unmasked / lane-dense).
    w1p = jnp.zeros((c_in, hid_pad), jnp.float32).at[:, :hid].set(w1)
    b1p = jnp.zeros((1, hid_pad), jnp.float32).at[:, :hid].set(b1.reshape(1, -1))
    w2p = jnp.zeros((hid_pad, out_pad), jnp.float32).at[:hid, :c_out].set(w2)
    b2p = jnp.zeros((1, out_pad), jnp.float32).at[:, :c_out].set(b2.reshape(1, -1))

    n128 = _round_up(n, _LANE)
    fast_bytes = 3 * n128 * n128 + 24 * _LANE * n128 + (1 << 20)
    use_fast = (not force_tiled) and fast_bytes <= budget

    if use_fast:
        # ---- fused single-kernel path: A read from HBM exactly once ------- #
        a_i8, d = _build_graph(edge_index, n, n128, n128)
        d_col = jnp.zeros((n128, 1), jnp.float32).at[:n, 0].set(d)
        x_pad = jnp.zeros((n128, c_in), jnp.float32).at[:n, :].set(x)
        m1 = (d_col * (x_pad @ w1p)).astype(jnp.bfloat16)
        out = pl.pallas_call(
            _gcn_fused_kernel,
            out_shape=jax.ShapeDtypeStruct((n128, out_pad), jnp.float32),
            compiler_params=pltpu.CompilerParams(vmem_limit_bytes=vmem_limit),
        )(a_i8, d_col, m1, b1p, w2p, b2p)
        return out[:n, :c_out].reshape(-1)

    # ---- general path: two K-tiled row passes over int8 (A+I) ------------- #
    tm, tk = _choose_tiles(n, max(hid_pad, out_pad), budget)
    n_rows = _round_up(n, tm)      # rows padded to the row tile
    n_cols = _round_up(n, tk)      # cols padded independently (~128)
    a_i8, d = _build_graph(edge_index, n, n_rows, n_cols)
    d_row = jnp.zeros((n_rows, 1), jnp.float32).at[:n, 0].set(d)
    d_col = jnp.zeros((n_cols, 1), jnp.float32).at[:n, 0].set(d)

    x_pad = jnp.zeros((n_cols, c_in), jnp.float32).at[:n, :].set(x)
    m1 = (d_col * (x_pad @ w1p)).astype(jnp.bfloat16)            # [n_cols, hid_pad]
    h1 = _propagate(a_i8, m1, b1p, d_row, tm, tk,
                    _relu, jnp.bfloat16, vmem_limit)             # [n_rows, hid_pad]
    # TODO(synk): dropout is identity (eval mode); training needs in-kernel PRNG.

    # Layer-2 operand rows are indexed by A's *columns*; rows >= n hit all-zero
    # columns of A, so their contents are irrelevant.
    if n_rows >= n_cols:
        h1c = h1[:n_cols]
    else:
        h1c = jnp.zeros((n_cols, hid_pad), h1.dtype).at[:n_rows].set(h1)
    m2 = (d_col * (h1c.astype(jnp.float32) @ w2p)).astype(jnp.bfloat16)  # [n_cols, out_pad]
    out = _propagate(a_i8, m2, b2p, d_row, tm, tk,
                     jax.nn.sigmoid, jnp.float32, vmem_limit)    # [n_rows, out_pad]
    return out[:n, :c_out].reshape(-1)


# ------------------------------ params / ref -------------------------------- #
def init_params(key, in_channels, hidden, out_channels):
    k1, k2 = jax.random.split(key)

    def glorot(k, fan_in, fan_out):
        lim = jnp.sqrt(6.0 / (fan_in + fan_out))
        return jax.random.uniform(k, (fan_in, fan_out), jnp.float32, -lim, lim)

    return {
        "w1": glorot(k1, in_channels, hidden),
        "b1": jnp.zeros((hidden,), jnp.float32),
        "w2": glorot(k2, hidden, out_channels),
        "b2": jnp.zeros((out_channels,), jnp.float32),
    }


def _reference(x, edge_index, params):
    n = x.shape[0]
    src, dst = edge_index[0], edge_index[1]
    a = jnp.zeros((n, n), jnp.float32).at[dst, src].add(1.0) + jnp.eye(n, dtype=jnp.float32)
    deg = a.sum(axis=1)
    dis = jnp.where(deg > 0, 1.0 / jnp.sqrt(deg), 0.0)
    a_hat = dis[:, None] * a * dis[None, :]
    h = jnp.maximum(a_hat @ (x @ params["w1"]) + params["b1"].reshape(1, -1), 0.0)
    o = jax.nn.sigmoid(a_hat @ (h @ params["w2"]) + params["b2"].reshape(1, -1))
    return o.reshape(-1)


if __name__ == "__main__":
    key = jax.random.PRNGKey(0)
    k_x, k_p, k_x2, k_s, k_o = jax.random.split(key, 5)

    in_channels, hidden, out_channels = 4, 32, 3
    params = init_params(k_p, in_channels, hidden, out_channels)

    # ---- small graph: fused single-kernel fast path ------------------------ #
    n1 = 8
    x1 = jax.random.normal(k_x, (n1, in_channels), jnp.float32)
    src = jnp.arange(n1, dtype=jnp.int32)
    dst = (src + 1) % n1
    ei1 = jnp.stack([jnp.concatenate([src, dst]), jnp.concatenate([dst, src])], axis=0)

    out1 = jax.block_until_ready(gcn_forward(x1, ei1, params))
    assert out1.shape == (n1 * out_channels,)
    assert bool(jnp.all((out1 >= 0.0) & (out1 <= 1.0)))
    assert bool(jnp.allclose(out1, _reference(x1, ei1, params), atol=2e-2, rtol=2e-2)), \
        "fused fast path diverges from f32 reference"

    # ---- larger graph: force the K-tiled general path (multi-tile grid) ---- #
    n2 = 520
    x2 = jax.random.normal(k_x2, (n2, in_channels), jnp.float32)
    n_e = 1500
    s2 = jax.random.randint(k_s, (n_e,), 0, n2, dtype=jnp.int32)
    off = jax.random.randint(k_o, (n_e,), 1, n2, dtype=jnp.int32)
    d2 = (s2 + off) % n2                     # no self loops by construction
    ei2 = jnp.stack([jnp.concatenate([s2, d2]), jnp.concatenate([d2, s2])], axis=0)

    out2 = jax.block_until_ready(gcn_forward(x2, ei2, params, force_tiled=True))
    assert out2.shape == (n2 * out_channels,)
    assert bool(jnp.all((out2 >= 0.0) & (out2 <= 1.0)))
    assert bool(jnp.allclose(out2, _reference(x2, ei2, params), atol=2e-2, rtol=2e-2)), \
        "tiled path diverges from f32 reference"

    print("KERNEL_OK")
</pallas_src>

<mosaic_0001>
module attributes {stable_mosaic.version = 11 : i64} {
  func.func private @main(%arg0: i32) attributes {dimension_semantics = [#tpu.dimension_semantics<core_parallel>], iteration_bounds = array<i64: 2>, tpu.core_type = #tpu.core_type<sc_scalar_subcore>, window_params = []} {
    return
  }
}

module attributes {stable_mosaic.version = 11 : i64} {
  func.func private @main(%arg0: i32) attributes {dimension_semantics = [#tpu.dimension_semantics<core_parallel>], iteration_bounds = array<i64: 2>, tpu.core_type = #tpu.core_type<sc_scalar_subcore>, window_params = []} {
    return
  }
}

module attributes {stable_mosaic.version = 11 : i64} {
  func.func @_gcn_fused_kernel(%arg0: memref<128x128xi8, #tpu.memory_space<vmem>>, %arg1: memref<128x1xf32, #tpu.memory_space<vmem>>, %arg2: memref<128x128xbf16, #tpu.memory_space<vmem>>, %arg3: memref<1x128xf32, #tpu.memory_space<vmem>>, %arg4: memref<128x128xf32, #tpu.memory_space<vmem>>, %arg5: memref<1x128xf32, #tpu.memory_space<vmem>>, %arg6: memref<128x128xf32, #tpu.memory_space<vmem>>) attributes {dimension_semantics = [], scalar_prefetch = 0 : i64, scratch_operands = 0 : i64, tpu.core_type = #tpu.core_type<tc>} {
    %c0 = arith.constant 0 : index
    %c0_0 = arith.constant 0 : index
    %0 = vector.load %arg0[%c0, %c0_0] : memref<128x128xi8, #tpu.memory_space<vmem>>, vector<128x128xi8>
    %1 = arith.sitofp %0 : vector<128x128xi8> to vector<128x128xbf16>
    %c0_1 = arith.constant 0 : index
    %c0_2 = arith.constant 0 : index
    %2 = vector.load %arg1[%c0_1, %c0_2] : memref<128x1xf32, #tpu.memory_space<vmem>>, vector<128x1xf32>
    %c0_3 = arith.constant 0 : index
    %c0_4 = arith.constant 0 : index
    %3 = vector.load %arg2[%c0_3, %c0_4] : memref<128x128xbf16, #tpu.memory_space<vmem>>, vector<128x128xbf16>
    %cst = arith.constant dense<0.000000e+00> : vector<128x128xf32>
    %4 = tpu.matmul %1, %3, %cst {dimension_numbers = #tpu.dot_dimension_numbers<[1], [0], [0], [1], [0, 0, 1, 1], [], []>} : vector<128x128xbf16>, vector<128x128xbf16>, vector<128x128xf32> -> vector<128x128xf32>
    %5 = vector.broadcast %2 : vector<128x1xf32> to vector<128x128xf32>
    %6 = arith.mulf %5, %4 : vector<128x128xf32>
    %c0_5 = arith.constant 0 : index
    %c0_6 = arith.constant 0 : index
    %7 = vector.load %arg3[%c0_5, %c0_6] : memref<1x128xf32, #tpu.memory_space<vmem>>, vector<1x128xf32>
    %8 = vector.broadcast %7 : vector<1x128xf32> to vector<128x128xf32>
    %9 = arith.addf %6, %8 : vector<128x128xf32>
    %cst_7 = arith.constant 0.000000e+00 : f32
    %10 = vector.broadcast %cst_7 : f32 to vector<128x128xf32>
    %11 = arith.maximumf %9, %10 : vector<128x128xf32>
    %12 = vector.broadcast %2 : vector<128x1xf32> to vector<128x128xf32>
    %13 = arith.mulf %12, %11 : vector<128x128xf32>
    %c0_8 = arith.constant 0 : index
    %c0_9 = arith.constant 0 : index
    %14 = vector.load %arg4[%c0_8, %c0_9] : memref<128x128xf32, #tpu.memory_space<vmem>>, vector<128x128xf32>
    %cst_10 = arith.constant dense<0.000000e+00> : vector<128x128xf32>
    %15 = tpu.matmul %13, %14, %cst_10 {dimension_numbers = #tpu.dot_dimension_numbers<[1], [0], [0], [1], [0, 0, 1, 1], [], []>} : vector<128x128xf32>, vector<128x128xf32>, vector<128x128xf32> -> vector<128x128xf32>
    %16 = arith.truncf %15 : vector<128x128xf32> to vector<128x128xbf16>
    %cst_11 = arith.constant dense<0.000000e+00> : vector<128x128xf32>
    %17 = tpu.matmul %1, %16, %cst_11 {dimension_numbers = #tpu.dot_dimension_numbers<[1], [0], [0], [1], [0, 0, 1, 1], [], []>} : vector<128x128xbf16>, vector<128x128xbf16>, vector<128x128xf32> -> vector<128x128xf32>
    %18 = vector.broadcast %2 : vector<128x1xf32> to vector<128x128xf32>
    %19 = arith.mulf %18, %17 : vector<128x128xf32>
    %c0_12 = arith.constant 0 : index
    %c0_13 = arith.constant 0 : index
    %20 = vector.load %arg5[%c0_12, %c0_13] : memref<1x128xf32, #tpu.memory_space<vmem>>, vector<1x128xf32>
    %21 = vector.broadcast %20 : vector<1x128xf32> to vector<128x128xf32>
    %22 = arith.addf %19, %21 : vector<128x128xf32>
    %23 = arith.negf %22 : vector<128x128xf32>
    %24 = math.exp %23 : vector<128x128xf32>
    %cst_14 = arith.constant 1.000000e+00 : f32
    %25 = vector.broadcast %cst_14 : f32 to vector<128x128xf32>
    %26 = arith.addf %25, %24 : vector<128x128xf32>
    %27 = arith.divf %25, %26 : vector<128x128xf32>
    %c0_15 = arith.constant 0 : index
    %c0_16 = arith.constant 0 : index
    %28 = vector.load %arg6[%c0_15, %c0_16] : memref<128x128xf32, #tpu.memory_space<vmem>>, vector<128x128xf32>
    tpu.vector_store %arg6[%c0_15, %c0_16], %27 {strides = array<i32>} : memref<128x128xf32, #tpu.memory_space<vmem>>, vector<128x128xf32>,
    return
  }
}

</mosaic_0001>

<bundles_post_ra>
// kernel: gcn_forward.1
= control target key start
LH: loop header
LB: loop body
LE: loop exit
PB: predicated region body
PF: predicated region fallthrough
CT: control target
= control target key end

     0   :  { %v1118_v1 = vmov 0   ;;  %s1504_s2 = inlined_call_operand.vmem [shape: bf16[128,128], index: 2, kind: input, shape index: {}]   ;;  %s1505_s0 = inlined_call_operand.vmem [shape: s8[128,128], index: 0, kind: input, shape index: {}]   ;;  %s1506_s1 = inlined_call_operand.vmem [shape: f32[128,1], index: 1, kind: input, shape index: {}]   ;;  %s1507_s4 = inlined_call_operand.vmem [shape: f32[128,128], index: 4, kind: input, shape index: {}]   ;;  %s1508_s3 = inlined_call_operand.vmem [shape: f32[1,128], index: 3, kind: input, shape index: {}]   ;;  %s1509_s5 = inlined_call_operand.vmem [shape: f32[1,128], index: 5, kind: input, shape index: {}]   ;;  %s1510_s6 = inlined_call_operand.vmem [shape: f32[128,128], index: 6, kind: output, shape index: {}]  }
   0x1   :  { %v1046_v0 = vld [vmem:[%s1504_s2] sm:$0xff]   ;;  %1044 = vset.pattern.permute.xlu0 %v1118_v1  ;;  %1045 = vset.pattern.permute.xlu1 %v1118_v1  ;;  %v1047_v2 = vld [vmem:[%s1504_s2 + $0x8] sm:$0xff]   ;;  %v1048_v3 = vld [vmem:[%s1504_s2 + $0x10] sm:$0xff]  }
   0x2   :  { %875 = vmatprep.subr.bf16.mxu0 %v1046_v0  ;;  %v1049_v4 = vld [vmem:[%s1504_s2 + $0x18] sm:$0xff]   ;;  %v1169_v5 = vld [vmem:[%s1505_s0] sm:$0xff]  ;;  %v38_v8 = vld [vmem:[%s1506_s1 + $0x10] sm:$0xff] }
   0x3   :  { %876 = vmatpush3.bf16.msra.mxu0 %v1046_v0  ;;  %v28_v6 = vunpack.c.l.s8.bf16 %v1169_v5  ;;  %v36_v7 = vld [vmem:[%s1506_s1] sm:$0xff]  ;;  %225 = vperm.xlu1 %1045, %v38_v8   ;;  %v37_v9 = vld [vmem:[%s1506_s1 + $0x8] sm:$0xff]  ;;  %v39_v10 = vld [vmem:[%s1506_s1 + $0x18] sm:$0xff]  ;;  %v29_v35 = vunpack.c.h.s8.bf16 %v1169_v5 }
   0x4   :  { %877 = vmatprep.subr.bf16.mxu0 %v1047_v2  ;;  %215 = vperm.xlu0 %1044, %v36_v7   ;;  %v1050_v11 = vld [vmem:[%s1504_s2 + $0x20] sm:$0xff]   ;;  %v41_v13 = vld [vmem:[%s1506_s1 + $0x28] sm:$0xff]  ;;  %v42_v17 = vld [vmem:[%s1506_s1 + $0x30] sm:$0xff] }
   0x5   :  { %891 = vmatprep.mubr.bf16.mxu0 %v28_v6  ;;  %v40_v12 = vld [vmem:[%s1506_s1 + $0x20] sm:$0xff]  ;;  %v1051_v14 = vld [vmem:[%s1504_s2 + $0x28] sm:$0xff]   ;;  %v43_v18 = vld [vmem:[%s1506_s1 + $0x38] sm:$0xff] }
   0x6   :  { %v364_v15 = vld [vmem:[%s1507_s4] sm:$0xff]  ;;  %v365_v16 = vld [vmem:[%s1507_s4 + $0x8] sm:$0xff]  ;;  %v1052_v20 = vld [vmem:[%s1504_s2 + $0x30] sm:$0xff]  }
   0x7   :  { %878 = vmatpush3.bf16.msra.mxu0 %v1047_v2  ;;  %230 = vperm.xlu1 %1045, %v39_v10   ;;  %v995_v19 = vpack.c.bf16 %v365_v16, %v364_v15  ;;  %v366_v21 = vld [vmem:[%s1507_s4 + $0x10] sm:$0xff]  ;;  %v367_v22 = vld [vmem:[%s1507_s4 + $0x18] sm:$0xff]  ;;  %v44_v24 = vld [vmem:[%s1506_s1 + $0x40] sm:$0xff] }
   0x8   :  { %879 = vmatprep.subr.bf16.mxu0 %v1048_v3  ;;  %220 = vperm.xlu0 %1044, %v37_v9   ;;  %v999_v23 = vpack.c.bf16 %v367_v22, %v366_v21  ;;  %v45_v25 = vld [vmem:[%s1506_s1 + $0x48] sm:$0xff]  ;;  %v1053_v26 = vld [vmem:[%s1504_s2 + $0x38] sm:$0xff]   ;;  %v368_v27 = vld [vmem:[%s1507_s4 + $0x20] sm:$0xff] }
   0x9   :  { %996 = vmatprep.subr.bf16.mxu1 %v995_v19  ;;  %v369_v28 = vld [vmem:[%s1507_s4 + $0x28] sm:$0xff]  ;;  %v46_v30 = vld [vmem:[%s1506_s1 + $0x50] sm:$0xff]  ;;  %v47_v31 = vld [vmem:[%s1506_s1 + $0x58] sm:$0xff] }
   0xa   :  { %998 = vmatpush3.bf16.msra.mxu1 %v995_v19  ;;  %v1003_v29 = vpack.c.bf16 %v369_v28, %v368_v27  ;;  %v1243_v32 = vld [vmem:[%s1505_s0 + $0x8] sm:$0xff]  ;;  %v370_v33 = vld [vmem:[%s1507_s4 + $0x30] sm:$0xff]  ;;  %v371_v34 = vld [vmem:[%s1507_s4 + $0x38] sm:$0xff] }
   0xb   :  { %880 = vmatpush3.bf16.msra.mxu0 %v1048_v3  ;;  %240 = vperm.xlu1 %1045, %v41_v13   ;;  %v1007_v36 = vpack.c.bf16 %v371_v34, %v370_v33  ;;  %v30_v37 = vunpack.c.l.s8.bf16 %v1243_v32  ;;  %v48_v38 = vld [vmem:[%s1506_s1 + $0x60] sm:$0xff]  ;;  %v49_v39 = vld [vmem:[%s1506_s1 + $0x68] sm:$0xff]  ;;  %v50_v43 = vld [vmem:[%s1506_s1 + $0x70] sm:$0xff]  ;;  %v31_v46 = vunpack.c.h.s8.bf16 %v1243_v32 }
   0xc   :  { %881 = vmatprep.subr.bf16.mxu0 %v1049_v4  ;;  %235 = vperm.xlu0 %1044, %v40_v12   ;;  %v372_v40 = vld [vmem:[%s1507_s4 + $0x40] sm:$0xff]  ;;  %v373_v41 = vld [vmem:[%s1507_s4 + $0x48] sm:$0xff]  ;;  %v1275_v44 = vld [vmem:[%s1505_s0 + $0x10] sm:$0xff] }
   0xd   :  { %1000 = vmatprep.subr.bf16.mxu1 %v999_v23  ;;  %v1011_v42 = vpack.c.bf16 %v373_v41, %v372_v40  ;;  %v51_v45 = vld [vmem:[%s1506_s1 + $0x78] sm:$0xff]  ;;  %v32_v47 = vunpack.c.l.s8.bf16 %v1275_v44  ;;  %v33_v49 = vunpack.c.h.s8.bf16 %v1275_v44  ;;  %v374_v52 = vld [vmem:[%s1507_s4 + $0x50] sm:$0xff]  ;;  %v376_v55 = vld [vmem:[%s1507_s4 + $0x60] sm:$0xff] }
   0xe   :  { %1002 = vmatpush3.bf16.msra.mxu1 %v999_v23  ;;  %v1289_v48 = vld [vmem:[%s1505_s0 + $0x18] sm:$0xff]  ;;  %v377_v56 = vld [vmem:[%s1507_s4 + $0x68] sm:$0xff]  ;;  %v378_v58 = vld [vmem:[%s1507_s4 + $0x70] sm:$0xff] }
   0xf   :  { %882 = vmatpush3.bf16.msra.mxu0 %v1049_v4  ;;  %250 = vperm.xlu1 %1045, %v43_v18   ;;  %v34_v50 = vunpack.c.l.s8.bf16 %v1289_v48  ;;  %v35_v51 = vunpack.c.h.s8.bf16 %v1289_v48  ;;  %v375_v53 = vld [vmem:[%s1507_s4 + $0x58] sm:$0xff]  ;;  %v1019_v57 = vpack.c.bf16 %v377_v56, %v376_v55  ;;  %v1422_v5 = vld [vmem:[%s1509_s5] ss:$0 sm:$0xff] }
  0x10   :  { %883 = vmatprep.subr.bf16.mxu0 %v1050_v11  ;;  %245 = vperm.xlu0 %1044, %v42_v17   ;;  %v1015_v54 = vpack.c.bf16 %v375_v53, %v374_v52  ;;  %v379_v59 = vld [vmem:[%s1507_s4 + $0x78] sm:$0xff] }
  0x11   :  { %1004 = vmatprep.subr.bf16.mxu1 %v1003_v29  ;;  %v1023_v60 = vpack.c.bf16 %v379_v59, %v378_v58 }
  0x12   :  { %1006 = vmatpush3.bf16.msra.mxu1 %v1003_v29 }
  0x13   :  { %884 = vmatpush3.bf16.msra.mxu0 %v1050_v11  ;;  %260 = vperm.xlu1 %1045, %v45_v25  }
  0x14   :  { %885 = vmatprep.subr.bf16.mxu0 %v1051_v14  ;;  %255 = vperm.xlu0 %1044, %v44_v24  }
  0x15   :  { %1008 = vmatprep.subr.bf16.mxu1 %v1007_v36 }
  0x16   :  { %1010 = vmatpush3.bf16.msra.mxu1 %v1007_v36 }
  0x17   :  { %886 = vmatpush3.bf16.msra.mxu0 %v1051_v14  ;;  %270 = vperm.xlu1 %1045, %v47_v31  }
  0x18   :  { %887 = vmatprep.subr.bf16.mxu0 %v1052_v20  ;;  %265 = vperm.xlu0 %1044, %v46_v30  }
  0x19   :  { %1012 = vmatprep.subr.bf16.mxu1 %v1011_v42 }
  0x1a   :  { %1014 = vmatpush3.bf16.msra.mxu1 %v1011_v42 }
  0x1b   :  { %888 = vmatpush3.bf16.msra.mxu0 %v1052_v20  ;;  %280 = vperm.xlu1 %1045, %v49_v39  }
  0x1c   :  { %889 = vmatprep.subr.bf16.mxu0 %v1053_v26  ;;  %275 = vperm.xlu0 %1044, %v48_v38  }
  0x1d   :  { %1016 = vmatprep.subr.bf16.mxu1 %v1015_v54 }
  0x1e   :  { %1018 = vmatpush3.bf16.msra.mxu1 %v1015_v54 }
  0x1f   :  { %890 = vmatpush3.bf16.msra.mxu0 %v1053_v26  ;;  %290 = vperm.xlu1 %1045, %v51_v45  }
  0x20   :  { %285 = vperm.xlu0 %1044, %v50_v43   ;;  %1020 = vmatprep.subr.bf16.mxu1 %v1019_v57 }
  0x22   :  { %892 = vmatmul.mubr.bf16.vlgmr.msra.gmra.mrb[0].mxu0 %v29_v35  ;;  %1022 = vmatpush3.bf16.msra.mxu1 %v1019_v57 }
  0x23   :  { %895 = vmatprep.mubr.bf16.mxu0 %v30_v37  ;;  %1024 = vmatprep.subr.bf16.mxu1 %v1023_v60 }
  0x26   :  { %1026 = vmatpush3.bf16.msra.mxu1 %v1023_v60 }
  0x2a   :  { %896 = vmatmul.mubr.bf16.gmra.mrb[4].mxu0 %v31_v46 }
  0x2b   :  { %899 = vmatprep.mubr.bf16.mxu0 %v32_v47 }
  0x32   :  { %900 = vmatmul.mubr.bf16.gmra.mrb[8].mxu0 %v33_v49 }
  0x33   :  { %903 = vmatprep.mubr.bf16.mxu0 %v34_v50 }
  0x3a   :  { %904 = vmatmul.mubr.bf16.gmra.mrb[12].mxu0 %v35_v51 }
  0x3b   :  { %979 = vmatprep.mubr.bf16.mxu0 %v28_v6  ;;  %v1337_v6 = vld [vmem:[%s1508_s3] ss:$0 sm:$0xff] }
  0x82   :  { %v1322_v62 = vpop.permute.xlu1 %225 }
  0x83   :  { %v1320_v61 = vpop.permute.xlu0 %215 }
  0x86   :  { %v1326_v0 = vpop.permute.xlu1 %230 }
  0x87   :  { %v1324_v63 = vpop.permute.xlu0 %220 }
  0x8a   :  { %v1330_v2 = vpop.permute.xlu1 %240 }
  0x8b   :  { %v1328_v1 = vpop.permute.xlu0 %235 }
  0x8e   :  { %v1340_v9 = vpop.permute.xlu1 %250 }
  0x8f   :  { %v1332_v3 = vpop.permute.xlu0 %245 }
  0x92   :  { %v1351_v22 = vpop.permute.xlu1 %260 }
  0x93   :  { %v1347_v17 = vpop.permute.xlu0 %255 }
  0x96   :  { %v1364_v42 = vpop.permute.xlu1 %270 }
  0x97   :  { %v1360_v39 = vpop.permute.xlu0 %265 }
  0x9b   :  { %v1371_v60 = vpop.permute.xlu0 %275 }
  0xf5   :  { %v893_v4 = vpop.f32.mrb[0].mxu0 }
  0xf6   :  { %v295_v7 = vmul.f32 %v893_v4, %v1322_v62  ;;  %v150_v8 = vpop.f32.mrb[1].mxu0 }
  0xf7   :  { %v293_v10 = vmul.f32 %v1320_v61, %v150_v8  ;;  %v894_v11 = vpop.f32.mrb[2].mxu0 }
  0xf8   :  { %v318_v12 = vadd.f32 %v1337_v6, %v295_v7  ;;  %v296_v13 = vmul.f32 %v894_v11, %v1326_v0  ;;  %v153_v14 = vpop.f32.mrb[3].mxu0 }
  0xf9   :  { %v294_v15 = vmul.f32 %v1324_v63, %v153_v14  ;;  %v316_v16 = vadd.f32 %v1337_v6, %v293_v10 }
  0xfa   :  { %v319_v18 = vadd.f32 %v1337_v6, %v296_v13  ;;  %v334_v21 = vmax.f32 %v318_v12, 0.0 }
  0xfb   :  { %v317_v19 = vadd.f32 %v1337_v6, %v294_v15  ;;  %v332_v20 = vmax.f32 %v316_v16, 0.0  ;;  %v1378_v15 = vpop.permute.xlu1 %280 }
  0xfc   :  { %v335_v28 = vmax.f32 %v319_v18, 0.0  ;;  %v350_v38 = vmul.f32 %v334_v21, %v1322_v62 }
  0xfd   :  { %v333_v23 = vmax.f32 %v317_v19, 0.0  ;;  %v897_v24 = vpop.f32.mrb[4].mxu0  ;;  %v348_v25 = vmul.f32 %v332_v20, %v1320_v61 }
  0xfe   :  { %v299_v26 = vmul.f32 %v897_v24, %v1332_v3  ;;  %v166_v27 = vpop.f32.mrb[5].mxu0  ;;  %v351_v53 = vmul.f32 %v335_v28, %v1326_v0 }
  0xff   :  { %v297_v29 = vmul.f32 %v1328_v1, %v166_v27  ;;  %v898_v30 = vpop.f32.mrb[6].mxu0  ;;  %939 = vmatprep.mubr.f32.mxu1 %v348_v25  ;;  %v349_v31 = vmul.f32 %v333_v23, %v1324_v63  ;;  %v1385_v25 = vpop.permute.xlu0 %285 }
 0x100   :  { %v322_v33 = vadd.f32 %v1337_v6, %v299_v26  ;;  %v300_v34 = vmul.f32 %v898_v30, %v1340_v9  ;;  %v169_v36 = vpop.f32.mrb[7].mxu0 }
 0x101   :  { %v320_v40 = vadd.f32 %v1337_v6, %v297_v29  ;;  %v298_v41 = vmul.f32 %v1330_v2, %v169_v36  ;;  %940 = vmatmul.mubr.f32.vlgmr.msra.gmra.mrb[0].mxu1 %v349_v31  ;;  %v1389_v31 = vpop.permute.xlu1 %290 }
 0x102   :  { %942 = vmatprep.mubr.f32.mxu1 %v350_v38  ;;  %v323_v45 = vadd.f32 %v1337_v6, %v300_v34  ;;  %v338_v54 = vmax.f32 %v322_v33, 0.0 }
 0x103   :  { %v336_v43 = vmax.f32 %v320_v40, 0.0  ;;  %v321_v52 = vadd.f32 %v1337_v6, %v298_v41 }
 0x104   :  { %v339_v4 = vmax.f32 %v323_v45, 0.0  ;;  %v354_v14 = vmul.f32 %v338_v54, %v1332_v3 }
 0x105   :  { %v337_v55 = vmax.f32 %v321_v52, 0.0  ;;  %v901_v56 = vpop.f32.mrb[8].mxu0  ;;  %943 = vmatmul.mubr.f32.gmra.mrb[2].mxu1 %v351_v53  ;;  %v352_v57 = vmul.f32 %v336_v43, %v1328_v1 }
 0x106   :  { %v303_v58 = vmul.f32 %v901_v56, %v1360_v39  ;;  %v182_v59 = vpop.f32.mrb[9].mxu0  ;;  %v355_v23 = vmul.f32 %v339_v4, %v1340_v9 }
 0x107   :  { %v301_v7 = vmul.f32 %v1347_v17, %v182_v59  ;;  %v902_v8 = vpop.f32.mrb[10].mxu0  ;;  %945 = vmatprep.mubr.f32.mxu1 %v352_v57  ;;  %v353_v10 = vmul.f32 %v337_v55, %v1330_v2 }
 0x108   :  { %v326_v11 = vadd.f32 %v1337_v6, %v303_v58  ;;  %v304_v12 = vmul.f32 %v902_v8, %v1364_v42  ;;  %v185_v13 = vpop.f32.mrb[11].mxu0 }
 0x109   :  { %v324_v16 = vadd.f32 %v1337_v6, %v301_v7  ;;  %v302_v18 = vmul.f32 %v1351_v22, %v185_v13  ;;  %946 = vmatmul.mubr.f32.gmra.mrb[4].mxu1 %v353_v10 }
 0x10a   :  { %948 = vmatprep.mubr.f32.mxu1 %v354_v14  ;;  %v327_v20 = vadd.f32 %v1337_v6, %v304_v12  ;;  %v342_v24 = vmax.f32 %v326_v11, 0.0 }
 0x10b   :  { %v340_v19 = vmax.f32 %v324_v16, 0.0  ;;  %v325_v21 = vadd.f32 %v1337_v6, %v302_v18 }
 0x10c   :  { %v343_v33 = vmax.f32 %v327_v20, 0.0  ;;  %v358_v45 = vmul.f32 %v342_v24, %v1360_v39 }
 0x10d   :  { %v341_v26 = vmax.f32 %v325_v21, 0.0  ;;  %v905_v27 = vpop.f32.mrb[12].mxu0  ;;  %949 = vmatmul.mubr.f32.gmra.mrb[6].mxu1 %v355_v23  ;;  %v356_v28 = vmul.f32 %v340_v19, %v1347_v17 }
 0x10e   :  { %v307_v29 = vmul.f32 %v905_v27, %v1385_v25  ;;  %v198_v30 = vpop.f32.mrb[13].mxu0  ;;  %v359_v57 = vmul.f32 %v343_v33, %v1364_v42 }
 0x10f   :  { %v305_v34 = vmul.f32 %v1371_v60, %v198_v30  ;;  %v906_v36 = vpop.f32.mrb[14].mxu0  ;;  %951 = vmatprep.mubr.f32.mxu1 %v356_v28  ;;  %v357_v38 = vmul.f32 %v341_v26, %v1351_v22 }
 0x110   :  { %v330_v40 = vadd.f32 %v1337_v6, %v307_v29  ;;  %v308_v41 = vmul.f32 %v906_v36, %v1389_v31  ;;  %v201_v43 = vpop.f32.mrb[15].mxu0 }
 0x111   :  { %v328_v52 = vadd.f32 %v1337_v6, %v305_v34  ;;  %v306_v53 = vmul.f32 %v1378_v15, %v201_v43  ;;  %952 = vmatmul.mubr.f32.gmra.mrb[8].mxu1 %v357_v38 }
 0x112   :  { %954 = vmatprep.mubr.f32.mxu1 %v358_v45  ;;  %v331_v55 = vadd.f32 %v1337_v6, %v308_v41  ;;  %v346_v58 = vmax.f32 %v330_v40, 0.0 }
 0x113   :  { %v344_v54 = vmax.f32 %v328_v52, 0.0  ;;  %v329_v56 = vadd.f32 %v1337_v6, %v306_v53 }
 0x114   :  { %v347_v7 = vmax.f32 %v331_v55, 0.0  ;;  %v362_v10 = vmul.f32 %v346_v58, %v1385_v25 }
 0x115   :  { %v345_v59 = vmax.f32 %v329_v56, 0.0  ;;  %955 = vmatmul.mubr.f32.gmra.mrb[10].mxu1 %v359_v57  ;;  %v360_v4 = vmul.f32 %v344_v54, %v1371_v60 }
 0x116   :  { %v363_v11 = vmul.f32 %v347_v7, %v1389_v31 }
 0x117   :  { %957 = vmatprep.mubr.f32.mxu1 %v360_v4  ;;  %v361_v8 = vmul.f32 %v345_v59, %v1378_v15 }
 0x119   :  { %958 = vmatmul.mubr.f32.gmra.mrb[12].mxu1 %v361_v8 }
 0x11a   :  { %960 = vmatprep.mubr.f32.mxu1 %v362_v10 }
 0x11d   :  { %961 = vmatmul.mubr.f32.gmra.mrb[14].mxu1 %v363_v11 }
 0x11e   :  { %987 = vmatprep.mubr.bf16.mxu1 %v32_v47 }
 0x1d4   :  { %v941_v6 = vpop.f32.mrb[0].mxu1 }
 0x1d5   :  { %v446_v12 = vpop.f32.mrb[1].mxu1 }
 0x1d6   :  { %v525_v13 = vpack.c.bf16 %v941_v6, %v446_v12 }
 0x1d8   :  { %v944_v14 = vpop.f32.mrb[2].mxu1  ;;  %963 = vmatprep.subr.bf16.mxu0 %v525_v13  ;;  %1027 = vmatprep.subr.bf16.mxu1 %v525_v13 }
 0x1d9   :  { %v456_v16 = vpop.f32.mrb[3].mxu1  ;;  %964 = vmatpush3.bf16.msra.mxu0 %v525_v13  ;;  %1035 = vmatpush3.bf16.msra.mxu1 %v525_v13 }
 0x1da   :  { %v526_v18 = vpack.c.bf16 %v944_v14, %v456_v16 }
 0x1dc   :  { %v947_v19 = vpop.f32.mrb[4].mxu1  ;;  %965 = vmatprep.subr.bf16.mxu0 %v526_v18  ;;  %1028 = vmatprep.subr.bf16.mxu1 %v526_v18 }
 0x1dd   :  { %v466_v20 = vpop.f32.mrb[5].mxu1  ;;  %966 = vmatpush3.bf16.msra.mxu0 %v526_v18  ;;  %1036 = vmatpush3.bf16.msra.mxu1 %v526_v18 }
 0x1de   :  { %v527_v21 = vpack.c.bf16 %v947_v19, %v466_v20 }
 0x1e0   :  { %v950_v23 = vpop.f32.mrb[6].mxu1  ;;  %967 = vmatprep.subr.bf16.mxu0 %v527_v21  ;;  %1029 = vmatprep.subr.bf16.mxu1 %v527_v21 }
 0x1e1   :  { %v476_v47 = vpop.f32.mrb[7].mxu1  ;;  %968 = vmatpush3.bf16.msra.mxu0 %v527_v21  ;;  %1037 = vmatpush3.bf16.msra.mxu1 %v527_v21 }
 0x1e2   :  { %v528_v24 = vpack.c.bf16 %v950_v23, %v476_v47 }
 0x1e4   :  { %v953_v26 = vpop.f32.mrb[8].mxu1  ;;  %969 = vmatprep.subr.bf16.mxu0 %v528_v24  ;;  %1030 = vmatprep.subr.bf16.mxu1 %v528_v24 }
 0x1e5   :  { %v486_v27 = vpop.f32.mrb[9].mxu1  ;;  %970 = vmatpush3.bf16.msra.mxu0 %v528_v24  ;;  %1038 = vmatpush3.bf16.msra.mxu1 %v528_v24 }
 0x1e6   :  { %v529_v28 = vpack.c.bf16 %v953_v26, %v486_v27 }
 0x1e8   :  { %v956_v29 = vpop.f32.mrb[10].mxu1  ;;  %971 = vmatprep.subr.bf16.mxu0 %v529_v28  ;;  %1031 = vmatprep.subr.bf16.mxu1 %v529_v28 }
 0x1e9   :  { %v496_v30 = vpop.f32.mrb[11].mxu1  ;;  %972 = vmatpush3.bf16.msra.mxu0 %v529_v28  ;;  %1039 = vmatpush3.bf16.msra.mxu1 %v529_v28 }
 0x1ea   :  { %v530_v33 = vpack.c.bf16 %v956_v29, %v496_v30 }
 0x1ec   :  { %v959_v34 = vpop.f32.mrb[12].mxu1  ;;  %973 = vmatprep.subr.bf16.mxu0 %v530_v33  ;;  %1032 = vmatprep.subr.bf16.mxu1 %v530_v33 }
 0x1ed   :  { %v506_v36 = vpop.f32.mrb[13].mxu1  ;;  %974 = vmatpush3.bf16.msra.mxu0 %v530_v33  ;;  %1040 = vmatpush3.bf16.msra.mxu1 %v530_v33 }
 0x1ee   :  { %v531_v38 = vpack.c.bf16 %v959_v34, %v506_v36 }
 0x1f0   :  { %v962_v40 = vpop.f32.mrb[14].mxu1  ;;  %975 = vmatprep.subr.bf16.mxu0 %v531_v38  ;;  %1033 = vmatprep.subr.bf16.mxu1 %v531_v38 }
 0x1f1   :  { %v516_v41 = vpop.f32.mrb[15].mxu1  ;;  %976 = vmatpush3.bf16.msra.mxu0 %v531_v38  ;;  %1041 = vmatpush3.bf16.msra.mxu1 %v531_v38 }
 0x1f2   :  { %v532_v43 = vpack.c.bf16 %v962_v40, %v516_v41 }
 0x1f4   :  { %977 = vmatprep.subr.bf16.mxu0 %v532_v43  ;;  %1034 = vmatprep.subr.bf16.mxu1 %v532_v43 }
 0x1f5   :  { %978 = vmatpush3.bf16.msra.mxu0 %v532_v43  ;;  %1042 = vmatpush3.bf16.msra.mxu1 %v532_v43 }
 0x1f8   :  { %980 = vmatmul.mubr.bf16.vlgmr.msra.gmra.mrb[16].mxu0 %v29_v35  ;;  %988 = vmatmul.mubr.bf16.vlgmr.msra.gmra.mrb[16].mxu1 %v33_v49 }
 0x1f9   :  { %983 = vmatprep.mubr.bf16.mxu0 %v30_v37  ;;  %991 = vmatprep.mubr.bf16.mxu1 %v34_v50 }
 0x200   :  { %984 = vmatmul.mubr.bf16.gmra.mrb[20].mxu0 %v31_v46  ;;  %992 = vmatmul.mubr.bf16.gmra.mrb[20].mxu1 %v35_v51 }
 0x2cb   :  { %v981_v45 = vpop.f32.mrb[16].mxu0  ;;  %v989_v35 = vpop.f32.mrb[16].mxu1 }
 0x2cc   :  { %v632_v44 = vmul.f32 %v981_v45, %v1322_v62  ;;  %v640_v37 = vmul.f32 %v989_v35, %v1360_v39  ;;  %v567_v49 = vpop.f32.mrb[17].mxu0  ;;  %v599_v52 = vpop.f32.mrb[17].mxu1 }
 0x2cd   :  { %v630_v50 = vmul.f32 %v567_v49, %v1320_v61  ;;  %v638_v32 = vmul.f32 %v599_v52, %v1347_v17  ;;  %v982_v46 = vpop.f32.mrb[18].mxu0  ;;  %v990_v48 = vpop.f32.mrb[18].mxu1 }
 0x2ce   :  { %v655_v51 = vadd.f32 %v1422_v5, %v632_v44  ;;  %v663_v53 = vadd.f32 %v1422_v5, %v640_v37  ;;  %v633_v54 = vmul.f32 %v982_v46, %v1326_v0  ;;  %v641_v55 = vmul.f32 %v990_v48, %v1364_v42  ;;  %v570_v56 = vpop.f32.mrb[19].mxu0  ;;  %v602_v62 = vpop.f32.mrb[19].mxu1 }
 0x2cf   :  { %v653_v39 = vadd.f32 %v1422_v5, %v630_v50  ;;  %v661_v57 = vadd.f32 %v1422_v5, %v638_v32  ;;  %v631_v61 = vmul.f32 %v570_v56, %v1324_v63  ;;  %v639_v17 = vmul.f32 %v602_v62, %v1351_v22 }
 0x2d0   :  { %v797_v58 = vmul.f32 -1.442695, %v655_v51  ;;  %v805_v59 = vmul.f32 -1.442695, %v663_v53  ;;  %v656_v4 = vadd.f32 %v1422_v5, %v633_v54  ;;  %v664_v7 = vadd.f32 %v1422_v5, %v641_v55 }
 0x2d1   :  { %v795_v8 = vmul.f32 -1.442695, %v653_v39  ;;  %v803_v0 = vmul.f32 -1.442695, %v661_v57  ;;  %v654_v42 = vadd.f32 %v1422_v5, %v631_v61  ;;  %v662_v10 = vadd.f32 %v1422_v5, %v639_v17 }
 0x2d2   :  { %1054 = vpow2.f32 %v797_v58  ;;  %v798_v11 = vmul.f32 -1.442695, %v656_v4  ;;  %v806_v6 = vmul.f32 -1.442695, %v664_v7 }
 0x2d3   :  { %1056 = vpow2.f32 %v805_v59  ;;  %v985_v12 = vpop.f32.mrb[20].mxu0  ;;  %v993_v63 = vpop.f32.mrb[20].mxu1  ;;  %v796_v22 = vmul.f32 -1.442695, %v654_v42  ;;  %v804_v19 = vmul.f32 -1.442695, %v662_v10 }
 0x2d4   :  { %1058 = vpow2.f32 %v795_v8  ;;  %v636_v13 = vmul.f32 %v985_v12, %v1332_v3  ;;  %v644_v14 = vmul.f32 %v993_v63, %v1385_v25  ;;  %v583_v16 = vpop.f32.mrb[21].mxu0  ;;  %v615_v18 = vpop.f32.mrb[21].mxu1 }
 0x2d5   :  { %1060 = vpow2.f32 %v803_v0  ;;  %v634_v20 = vmul.f32 %v583_v16, %v1328_v1  ;;  %v642_v21 = vmul.f32 %v615_v18, %v1371_v60  ;;  %v986_v23 = vpop.f32.mrb[22].mxu0  ;;  %v994_v47 = vpop.f32.mrb[22].mxu1 }
 0x2d6   :  { %1062 = vpow2.f32 %v798_v11  ;;  %v659_v24 = vadd.f32 %v1422_v5, %v636_v13  ;;  %v667_v26 = vadd.f32 %v1422_v5, %v644_v14  ;;  %v637_v27 = vmul.f32 %v986_v23, %v1340_v9  ;;  %v586_v3 = vpop.f32.mrb[23].mxu0  ;;  %v618_v28 = vpop.f32.mrb[23].mxu1 }
 0x2d7   :  { %1064 = vpow2.f32 %v806_v6  ;;  %v657_v25 = vadd.f32 %v1422_v5, %v634_v20  ;;  %v665_v29 = vadd.f32 %v1422_v5, %v642_v21  ;;  %v645_v49 = vmul.f32 %v994_v47, %v1389_v31 }
 0x2d8   :  { %1066 = vpow2.f32 %v796_v22  ;;  %v801_v1 = vmul.f32 -1.442695, %v659_v24  ;;  %v809_v30 = vmul.f32 -1.442695, %v667_v26  ;;  %v660_v60 = vadd.f32 %v1422_v5, %v637_v27 }
 0x2d9   :  { %1068 = vpow2.f32 %v804_v19  ;;  %v799_v33 = vmul.f32 -1.442695, %v657_v25  ;;  %v807_v34 = vmul.f32 -1.442695, %v665_v29  ;;  %v635_v32 = vmul.f32 %v586_v3, %v1330_v2 }
 0x2da   :  { %1070 = vpow2.f32 %v801_v1  ;;  %v802_v36 = vmul.f32 -1.442695, %v660_v60  ;;  %v643_v51 = vmul.f32 %v618_v28, %v1378_v15  ;;  %v668_v62 = vadd.f32 %v1422_v5, %v645_v49 }
 0x2db   :  { %1072 = vpow2.f32 %v809_v30  ;;  %v658_v57 = vadd.f32 %v1422_v5, %v635_v32 }
 0x2dc   :  { %v1055_v38 = vpop.eup %1054  ;;  %1074 = vpow2.f32 %v799_v33  ;;  %v666_v17 = vadd.f32 %v1422_v5, %v643_v51  ;;  %v810_v7 = vmul.f32 -1.442695, %v668_v62 }
 0x2dd   :  { %v1057_v9 = vpop.eup %1056  ;;  %v719_v40 = vadd.f32 1.0, %v1055_v38  ;;  %1076 = vpow2.f32 %v807_v34  ;;  %v800_v42 = vmul.f32 -1.442695, %v658_v57 }
 0x2de   :  { %v1059_v41 = vpop.eup %1058  ;;  %v727_v43 = vadd.f32 1.0, %v1057_v9  ;;  %1078 = vpow2.f32 %v802_v36  ;;  %v808_v11 = vmul.f32 -1.442695, %v666_v17 }
 0x2df   :  { %v1061_v45 = vpop.eup %1060  ;;  %1080 = vrcp.f32 %v719_v40  ;;  %v717_v35 = vadd.f32 1.0, %v1059_v41 }
 0x2e0   :  { %v1063_v44 = vpop.eup %1062  ;;  %1082 = vrcp.f32 %v727_v43  ;;  %v725_v37 = vadd.f32 1.0, %v1061_v45 }
 0x2e1   :  { %v1065_v52 = vpop.eup %1064  ;;  %1084 = vrcp.f32 %v717_v35  ;;  %v720_v50 = vadd.f32 1.0, %v1063_v44 }
 0x2e2   :  { %v1067_v46 = vpop.eup %1066  ;;  %1086 = vrcp.f32 %v725_v37  ;;  %v728_v48 = vadd.f32 1.0, %v1065_v52 }
 0x2e3   :  { %v1069_v53 = vpop.eup %1068  ;;  %1088 = vrcp.f32 %v720_v50  ;;  %v718_v54 = vadd.f32 1.0, %v1067_v46 }
 0x2e4   :  { %v1071_v55 = vpop.eup %1070  ;;  %1090 = vrcp.f32 %v728_v48  ;;  %v726_v56 = vadd.f32 1.0, %v1069_v53 }
 0x2e5   :  { %v1073_v39 = vpop.eup %1072  ;;  %1092 = vrcp.f32 %v718_v54  ;;  %v723_v31 = vadd.f32 1.0, %v1071_v55 }
 0x2e6   :  { %v1075_v61 = vpop.eup %1074  ;;  %1094 = vrcp.f32 %v726_v56  ;;  %v731_v2 = vadd.f32 1.0, %v1073_v39 }
 0x2e7   :  { %v1077_v58 = vpop.eup %1076  ;;  %1096 = vrcp.f32 %v723_v31  ;;  %v721_v15 = vadd.f32 1.0, %v1075_v61 }
 0x2e8   :  { %v1079_v59 = vpop.eup %1078  ;;  %1098 = vrcp.f32 %v731_v2  ;;  %v729_v4 = vadd.f32 1.0, %v1077_v58 }
 0x2e9   :  { %v1081_v8 = vpop.eup %1080  ;;  %1100 = vrcp.f32 %v721_v15  ;;  %v724_v0 = vadd.f32 1.0, %v1079_v59 }
 0x2ea   :  { %v1083_v10 = vpop.eup %1082  ;;  %767 = vst [vmem:[%s1510_s6 + $0x10] sm:$0xff] %v1081_v8  ;;  %1102 = vrcp.f32 %v729_v4 }
 0x2eb   :  { %v1085_v6 = vpop.eup %1084  ;;  %775 = vst [vmem:[%s1510_s6 + $0x50] sm:$0xff] %v1083_v10  ;;  %1104 = vrcp.f32 %v724_v0 }
 0x2ec   :  { %v1087_v5 = vpop.eup %1086  ;;  %765 = vst [vmem:[%s1510_s6] sm:$0xff] %v1085_v6  ;;  %1106 = vpow2.f32 %v810_v7 }
 0x2ed   :  { %v1089_v12 = vpop.eup %1088  ;;  %773 = vst [vmem:[%s1510_s6 + $0x40] sm:$0xff] %v1087_v5  ;;  %1108 = vpow2.f32 %v800_v42 }
 0x2ee   :  { %v1091_v63 = vpop.eup %1090  ;;  %768 = vst [vmem:[%s1510_s6 + $0x18] sm:$0xff] %v1089_v12  ;;  %1110 = vpow2.f32 %v808_v11 }
 0x2ef   :  { %v1093_v22 = vpop.eup %1092  ;;  %776 = vst [vmem:[%s1510_s6 + $0x58] sm:$0xff] %v1091_v63 }
 0x2f0   :  { %v1095_v13 = vpop.eup %1094  ;;  %766 = vst [vmem:[%s1510_s6 + $0x8] sm:$0xff] %v1093_v22 }
 0x2f1   :  { %v1097_v14 = vpop.eup %1096  ;;  %774 = vst [vmem:[%s1510_s6 + $0x48] sm:$0xff] %v1095_v13 }
 0x2f2   :  { %v1099_v16 = vpop.eup %1098  ;;  %771 = vst [vmem:[%s1510_s6 + $0x30] sm:$0xff] %v1097_v14 }
 0x2f3   :  { %v1101_v18 = vpop.eup %1100  ;;  %779 = vst [vmem:[%s1510_s6 + $0x70] sm:$0xff] %v1099_v16 }
 0x2f4   :  { %v1103_v19 = vpop.eup %1102  ;;  %769 = vst [vmem:[%s1510_s6 + $0x20] sm:$0xff] %v1101_v18 }
 0x2f5   :  { %v1105_v20 = vpop.eup %1104  ;;  %777 = vst [vmem:[%s1510_s6 + $0x60] sm:$0xff] %v1103_v19 }
 0x2f6   :  { %v1107_v21 = vpop.eup %1106  ;;  %772 = vst [vmem:[%s1510_s6 + $0x38] sm:$0xff] %v1105_v20 }
 0x2f7   :  { %v1109_v23 = vpop.eup %1108  ;;  %v732_v47 = vadd.f32 1.0, %v1107_v21 }
 0x2f8   :  { %v1111_v24 = vpop.eup %1110  ;;  %v722_v26 = vadd.f32 1.0, %v1109_v23 }
 0x2f9   :  { %1112 = vrcp.f32 %v732_v47  ;;  %v730_v27 = vadd.f32 1.0, %v1111_v24 }
 0x2fa   :  { %1114 = vrcp.f32 %v722_v26 }
 0x2fb   :  { %1116 = vrcp.f32 %v730_v27 }
 0x303   :  { %v1113_v3 = vpop.eup %1112 }
 0x304   :  { %v1115_v28 = vpop.eup %1114  ;;  %780 = vst [vmem:[%s1510_s6 + $0x78] sm:$0xff] %v1113_v3 }
 0x305   :  { %v1117_v25 = vpop.eup %1116  ;;  %770 = vst [vmem:[%s1510_s6 + $0x28] sm:$0xff] %v1115_v28 }
 0x306   :  { %778 = vst [vmem:[%s1510_s6 + $0x68] sm:$0xff] %v1117_v25 }

</bundles_post_ra>
